<compile_context>
chip_gen: v5e
topology: v5e:2x2
jax: 0.10.0
libtpu: 0.0.40
codegen_flags: <defaults>
</compile_context>

<pallas_src>
import jax
import jax.numpy as jnp
from jax.experimental import pallas as pl
from jax.experimental.pallas import tpu as pltpu


def _frame_attention_kernel(x_ref, w_ref, pooled_ref, attn_ref):
    # x_ref:      (bb, T, D)  batch block of frame features (native dtype)
    # w_ref:      (1, D)      attn_proj weight row, lane-dense
    # pooled_ref: (bb, D)
    # attn_ref:   (bb, T)
    x = x_ref[...]                                    # keep x in its input dtype
    w = w_ref[...].astype(x.dtype)                    # (1, D)

    # attn_score[b, t] = sum_d x[b,t,d] * w[d].  Linear bias omitted: softmax
    # over T is shift-invariant, so a constant offset changes nothing downstream.
    # Multiply in the input dtype, accumulate in f32 (no stored f32 copy of x).
    prod = (x * w[None, :, :]).astype(jnp.float32)    # (bb, T, D)
    scores = jnp.sum(prod, axis=-1)                   # (bb, T) f32, lane-dense

    # softmax over T (lane axis)
    m = jnp.max(scores, axis=-1, keepdims=True)       # (bb, 1)
    e = jnp.exp(scores - m)                           # (bb, T)
    denom = jnp.sum(e, axis=-1, keepdims=True)        # (bb, 1)
    # exact reciprocal: outputs are checked against the f32 reference at 1e-5
    inv = pl.reciprocal(denom, approx=False)          # (bb, 1)

    # TODO(synk): nn.Dropout on the attention weights is a training-time
    # stochastic op; this kernel implements eval-mode forward semantics (identity).
    # Note: attn is returned in x.dtype (rounds the softmax for bf16 inputs).
    attn_ref[...] = (e * inv).astype(attn_ref.dtype)

    # pooled[b, d] = sum_t softmax[b,t] * x[b,t,d].  Reduce over T using the
    # UNNORMALIZED e and fold 1/denom into the (bb, D) result: the multiply stays
    # in the input dtype and only the accumulation / final scale is f32.
    pooled_un = jnp.sum(
        (e.astype(x.dtype)[:, :, None] * x).astype(jnp.float32), axis=1)  # (bb, D)
    pooled_ref[...] = (pooled_un * inv).astype(pooled_ref.dtype)


def _vmem_capacity_bytes():
    try:
        cap = getattr(pltpu.get_tpu_info(), "vmem_capacity_bytes", None)
        if cap:
            return int(cap)
    except Exception:
        pass
    return 128 << 20  # conservative default (v5e/v6e class)


def _plan_blocks(B, T, D, x_dtype, out_dtype):
    """Pick (bb, vmem_limit_bytes) from the chip generation and dtypes."""
    x_isz = jnp.dtype(x_dtype).itemsize
    o_isz = jnp.dtype(out_dtype).itemsize
    vmem_cap = _vmem_capacity_bytes()

    # Per-generation scoped-VMEM ceiling (leave headroom for Mosaic scratch).
    ceiling = (40 << 20) if vmem_cap <= (64 << 20) else (100 << 20)
    # f32 temporaries (score product, pooling product) scale as 4 / x_itemsize.
    tf = max(1, 4 // x_isz)
    budget = max(1 << 20, (ceiling - (8 << 20)) // (2 + 2 * tf))

    sub = 8 if o_isz >= 4 else 16           # sublane quantum for (bb, D)/(bb, T)
    per_b = max(T * D * x_isz, 1)
    bb = max(1, budget // per_b)
    # Keep >= 2 grid steps when the batch allows it so the "parallel" axis can
    # shard across v7x's two TensorCores (negligible cost on 1-TC v5e/v6e).
    if B >= 2 * sub:
        bb = min(bb, pl.cdiv(B, 2))
    if bb >= B:
        bb = B                              # block == full dim: always layout-legal
    else:
        bb = max(sub, (bb // sub) * sub)    # 8/16-aligned; cdiv grid clips the tail
        bb = min(bb, B)

    x_block = bb * per_b
    needed = (2 * x_block                       # double-buffered input block
              + 2 * bb * (T + D) * o_isz        # double-buffered output blocks
              + 2 * bb * T * D * 4              # f32 intermediates (worst case)
              + (4 << 20))                      # slack for Mosaic internals
    limit = max(32 << 20, min(needed, ceiling))
    if needed > ceiling:
        # bb is already at its floor for this (T, D): allow up to ~7/8 of physical
        # VMEM rather than failing outright.
        # TODO(synk): add a T-tiled (online-softmax) path for per-sample slabs that
        # cannot fit even a minimal batch block in VMEM (relevant on 64 MiB v7x).
        limit = min(needed, vmem_cap * 7 // 8)
    return int(bb), int(limit)


def light_visual_frame_attention(x, weight, bias):
    """x: [B, T, D]; weight: [1, D]; bias: [1]. Returns (pooled [B,D], attn [B,T]).

    `bias` is accepted for API parity with nn.Linear(D, 1) but not used: the
    softmax over the frame axis is invariant to the constant shift it adds, so
    both outputs are mathematically identical with or without it.
    """
    del bias
    B, T, D = x.shape
    w_row = weight.reshape(1, D).astype(jnp.float32)   # lane-dense weight row
    out_dtype = x.dtype

    bb, vmem_limit = _plan_blocks(B, T, D, x.dtype, out_dtype)
    grid = (pl.cdiv(B, bb),)

    x_isz = x.dtype.itemsize
    cost = pl.CostEstimate(
        flops=4 * B * T * D,                   # score matvec + weighted pooling
        transcendentals=B * T,                 # exp in the softmax
        bytes_accessed=B * T * D * x_isz + B * (T + D) * x_isz + D * 4,
    )

    pooled, attn = pl.pallas_call(
        _frame_attention_kernel,
        out_shape=(
            jax.ShapeDtypeStruct((B, D), out_dtype),
            jax.ShapeDtypeStruct((B, T), out_dtype),
        ),
        grid_spec=pltpu.PrefetchScalarGridSpec(
            num_scalar_prefetch=0,
            grid=grid,
            in_specs=[
                pl.BlockSpec((bb, T, D), lambda b: (b, 0, 0)),
                pl.BlockSpec((1, D), lambda b: (0, 0)),
            ],
            out_specs=[
                pl.BlockSpec((bb, D), lambda b: (b, 0)),
                pl.BlockSpec((bb, T), lambda b: (b, 0)),
            ],
        ),
        compiler_params=pltpu.CompilerParams(
            dimension_semantics=("parallel",),
            vmem_limit_bytes=vmem_limit,
        ),
        cost_estimate=cost,
    )(x, w_row)
    return pooled, attn


def _reference(x, weight, bias):
    scores = jnp.einsum("btd,d->bt", x, weight[0]) + bias[0]
    w = jax.nn.softmax(scores, axis=1)
    pooled = jnp.sum(w[..., None] * x, axis=1)
    return pooled, w


if __name__ == "__main__":
    key = jax.random.PRNGKey(0)
    B, T, D = 2, 8, 32
    kx, kw, kb = jax.random.split(key, 3)

    x = jax.random.normal(kx, (B, T, D), dtype=jnp.float32)
    # Deterministic init mimicking nn.Linear(D, 1): uniform(-1/sqrt(D), 1/sqrt(D))
    bound = 1.0 / jnp.sqrt(jnp.float32(D))
    weight = jax.random.uniform(kw, (1, D), minval=-bound, maxval=bound,
                                dtype=jnp.float32)
    bias = jax.random.uniform(kb, (1,), minval=-bound, maxval=bound,
                              dtype=jnp.float32)

    pooled, attn = light_visual_frame_attention(x, weight, bias)
    pooled = jax.block_until_ready(pooled)
    attn = jax.block_until_ready(attn)

    ref_pooled, ref_attn = _reference(x, weight, bias)
    assert pooled.shape == (B, D) and attn.shape == (B, T)
    assert jnp.allclose(pooled, ref_pooled, atol=1e-5, rtol=1e-5)
    assert jnp.allclose(attn, ref_attn, atol=1e-5, rtol=1e-5)

    print("KERNEL_OK")
</pallas_src>

<mosaic_0001>
module attributes {stable_mosaic.version = 11 : i64} {
  func.func @_frame_attention_kernel(%arg0: i32, %arg1: memref<2x8x32xf32, #tpu.memory_space<vmem>>, %arg2: memref<1x32xf32, #tpu.memory_space<vmem>>, %arg3: memref<2x32xf32, #tpu.memory_space<vmem>>, %arg4: memref<2x8xf32, #tpu.memory_space<vmem>>) attributes {dimension_semantics = [#tpu.dimension_semantics<parallel>], iteration_bounds = array<i64: 1>, scalar_prefetch = 0 : i64, scratch_operands = 0 : i64, tpu.core_type = #tpu.core_type<tc>, window_params = [{transform_indices = @transform_0, window_bounds = array<i64: 2, 8, 32>}, {pipeline_mode = #tpu.pipeline_mode<synchronous>, transform_indices = @transform_1, window_bounds = array<i64: 1, 32>}, {transform_indices = @transform_2, window_bounds = array<i64: 2, 32>}, {transform_indices = @transform_3, window_bounds = array<i64: 2, 8>}]} {
    %c0 = arith.constant 0 : index
    %c0_0 = arith.constant 0 : index
    %c0_1 = arith.constant 0 : index
    %0 = vector.load %arg1[%c0, %c0_0, %c0_1] : memref<2x8x32xf32, #tpu.memory_space<vmem>>, vector<2x8x32xf32>
    %c0_2 = arith.constant 0 : index
    %c0_3 = arith.constant 0 : index
    %1 = vector.load %arg2[%c0_2, %c0_3] : memref<1x32xf32, #tpu.memory_space<vmem>>, vector<1x32xf32>
    %2 = vector.shape_cast %1 : vector<1x32xf32> to vector<1x1x32xf32>
    %3 = vector.broadcast %2 : vector<1x1x32xf32> to vector<2x8x32xf32>
    %4 = arith.mulf %0, %3 : vector<2x8x32xf32>
    %cst = arith.constant dense<0.000000e+00> : vector<2x8xf32>
    %5 = vector.multi_reduction <add>, %4, %cst [2] : vector<2x8x32xf32> to vector<2x8xf32>
    %cst_4 = arith.constant dense<0xFF800000> : vector<2xf32>
    %6 = vector.multi_reduction <maximumf>, %5, %cst_4 [1] : vector<2x8xf32> to vector<2xf32>
    %7 = vector.shape_cast %6 : vector<2xf32> to vector<2x1xf32>
    %8 = vector.broadcast %7 : vector<2x1xf32> to vector<2x8xf32>
    %9 = arith.subf %5, %8 : vector<2x8xf32>
    %10 = math.exp %9 : vector<2x8xf32>
    %cst_5 = arith.constant dense<0.000000e+00> : vector<2xf32>
    %11 = vector.multi_reduction <add>, %10, %cst_5 [1] : vector<2x8xf32> to vector<2xf32>
    %12 = vector.shape_cast %11 : vector<2xf32> to vector<2x1xf32>
    %13 = tpu.reciprocal %12 : vector<2x1xf32> -> vector<2x1xf32>
    %14 = vector.broadcast %13 : vector<2x1xf32> to vector<2x8xf32>
    %15 = arith.mulf %10, %14 : vector<2x8xf32>
    %c0_6 = arith.constant 0 : index
    %c0_7 = arith.constant 0 : index
    %16 = vector.load %arg4[%c0_6, %c0_7] : memref<2x8xf32, #tpu.memory_space<vmem>>, vector<2x8xf32>
    tpu.vector_store %arg4[%c0_6, %c0_7], %15 {strides = array<i32>} : memref<2x8xf32, #tpu.memory_space<vmem>>, vector<2x8xf32>,
    %17 = vector.shape_cast %10 : vector<2x8xf32> to vector<2x8x1xf32>
    %18 = vector.broadcast %17 : vector<2x8x1xf32> to vector<2x8x32xf32>
    %19 = arith.mulf %18, %0 : vector<2x8x32xf32>
    %cst_8 = arith.constant dense<0.000000e+00> : vector<2x32xf32>
    %20 = vector.multi_reduction <add>, %19, %cst_8 [1] : vector<2x8x32xf32> to vector<2x32xf32>
    %21 = vector.broadcast %13 : vector<2x1xf32> to vector<2x32xf32>
    %22 = arith.mulf %20, %21 : vector<2x32xf32>
    %c0_9 = arith.constant 0 : index
    %c0_10 = arith.constant 0 : index
    %23 = vector.load %arg3[%c0_9, %c0_10] : memref<2x32xf32, #tpu.memory_space<vmem>>, vector<2x32xf32>
    tpu.vector_store %arg3[%c0_9, %c0_10], %22 {strides = array<i32>} : memref<2x32xf32, #tpu.memory_space<vmem>>, vector<2x32xf32>,
    return
  }
  func.func @transform_0(%arg0: i32) -> (i32, i32, i32) {
    %c0_i32 = arith.constant 0 : i32
    %c0_i32_0 = arith.constant 0 : i32
    %c0_i32_1 = arith.constant 0 : i32
    return %arg0, %c0_i32, %c0_i32_0 : i32, i32, i32
  }
  func.func @transform_1(%arg0: i32) -> (i32, i32) {
    %c0_i32 = arith.constant 0 : i32
    %c0_i32_0 = arith.constant 0 : i32
    %c0_i32_1 = arith.constant 0 : i32
    return %c0_i32, %c0_i32_0 : i32, i32
  }
  func.func @transform_2(%arg0: i32) -> (i32, i32) {
    %c0_i32 = arith.constant 0 : i32
    %c0_i32_0 = arith.constant 0 : i32
    return %arg0, %c0_i32 : i32, i32
  }
  func.func @transform_3(%arg0: i32) -> (i32, i32) {
    %c0_i32 = arith.constant 0 : i32
    %c0_i32_0 = arith.constant 0 : i32
    return %arg0, %c0_i32 : i32, i32
  }
}

</mosaic_0001>

<bundles_post_ra>
// kernel: tpu_custom_call.1
= control target key start
LH: loop header
LB: loop body
LE: loop exit
PB: predicated region body
PF: predicated region fallthrough
CT: control target
= control target key end

     0   :  { %9 = vsyncpa [#allocation3], 0  ;;  %s376_s0 = inlined_call_operand.hbm [shape: f32[2,8,32], index: 0, kind: input, shape index: {}]   ;;  %s377_s1 = inlined_call_operand.hbm [shape: f32[1,32], index: 1, kind: input, shape index: {}]   ;;  %s378_s2 = inlined_call_operand.hbm [shape: f32[2,32], index: 2, kind: output, shape index: {0}]   ;;  %s379_s3 = inlined_call_operand.hbm [shape: f32[2,8], index: 3, kind: output, shape index: {1}]  }
   0x1   :  { %10 = vsyncpa [#allocation6], 0 }
   0x2   :  { %11 = vsyncpa [#allocation4], 0 }
   0x3   :  { %12 = vsyncpa [#allocation9], 0  ;;  %s17_s14 = sshll.u32 %s376_s0, 4  ;;  %s318_s15 = smov [#allocation2]   ;;  %s18_s14 = int_to_ptr.hbm [resolvable:$true] %s17_s14 }
   0x4   :  { %s19_s16 = sshll.u32 %s318_s15, 4  ;;  %s31_s19 = sshll.u32 %s377_s1, 4  ;;  %s20_s16 = int_to_ptr.vmem [resolvable:$true] %s19_s16  ;;  %s32_s19 = int_to_ptr.hbm [resolvable:$true] %s31_s19 }
   0x5   :  { %s319_s20 = smov 128   ;;  %s320_s21 = smov 8  }
   0x6   :  { %25 = dma.hbm_to_vmem [thread:$0]  %s18_s14, 256, %s20_s16, [#allocation3], %s319_s20, %s319_s20, %s320_s21  }
   0x7   :  { %s321_s22 = smov [#allocation5]  }
   0x8   :  { %s33_s23 = sshll.u32 %s321_s22, 4  ;;  %s34_s23 = int_to_ptr.vmem [resolvable:$true] %s33_s23 }
   0x9   :  { %36 = dma.hbm_to_vmem [thread:$0]  %s32_s19, 16, %s34_s23, [#allocation6]  }
   0xa   :  { %310 = dma.done.wait [#allocation3], 256  }
   0xb   :  { %311 = vsyncadd [#allocation3], 4294967040 }
   0xc   :  { %312 = dma.done.wait [#allocation6], 16  }
   0xd   :  { %313 = vsyncadd [#allocation6], 4294967280  ;;  %v45_v0 = vld [vmem:[#allocation2] sm:$0xff]  ;;  %v207_v1 = vld [vmem:[#allocation5] ss:$0 sm:$0xff]  ;;  %vm53_vm0 = vcmask 261120   ;;  %v62_v8 = vlaneseq }
   0xe   :  { %v51_v2 = vmul.f32 %v207_v1, %v45_v0  ;;  %v46_v3 = vld [vmem:[#allocation2 + $0x8] sm:$0xff]  ;;  %vm66_vm1 = vcmask 1041409   ;;  %vm69_vm2 = vcmask 58368   ;;  %v322_v15 = vmov 0   ;;  %s323_s0 = smov [#allocation7]   ;;  %s170_s26 = sshll.u32 %s378_s2, 4  ;;  %s171_s26 = int_to_ptr.hbm [resolvable:$true] %s170_s26 }
   0xf   :  { %v52_v5 = vmul.f32 %v207_v1, %v46_v3  ;;  %v353_v9 = vand.u32 127, %v62_v8  ;;  %205 = vset.pattern.permute.xlu2 %v322_v15  ;;  %204 = vset.pattern.permute.xlu1 %v322_v15  ;;  %s168_s1 = sshll.u32 %s323_s0, 4  ;;  %vm161_vm7 = vcmask 254976   ;;  %s324_s27 = smov [#allocation8]   ;;  %s169_s1 = int_to_ptr.vmem [resolvable:$true] %s168_s1 }
  0x10   :  { %v54_v4 = vsel %vm53_vm0, %v51_v2, 0.0  ;;  %206 = vset.pattern.permute.xlu0 %v322_v15  ;;  %s179_s28 = sshll.u32 %s324_s27, 4  ;;  %s181_s4 = sshll.u32 %s379_s3, 4  ;;  %s180_s28 = int_to_ptr.vmem [resolvable:$true] %s179_s28  ;;  %s182_s4 = int_to_ptr.hbm [resolvable:$true] %s181_s4 }
  0x11   :  { %55 = vadd.xlane.f32.xlu0 %v54_v4  ;;  %v57_v6 = vsel %vm53_vm0, %v52_v5, 0.0 }
  0x19   :  { %58 = vadd.xlane.f32.xlu0 %v57_v6 }
  0x84   :  { %v56_v7 = vpop.xlane.xlu0 %55 }
  0x85   :  { %v64_v11 = vperm.slane %v56_v7, %v353_v9 }
  0x8c   :  { %v59_v10 = vpop.xlane.xlu0 %58 }
  0x8d   :  { %v65_v12 = vperm.slane %v59_v10, %v353_v9 }
  0x8f   :  { %v67_v13 = vsel %vm66_vm1, %v65_v12, %v64_v11 }
  0x90   :  { %v70_v14 = vsel %vm69_vm2, %v67_v13, -inf }
  0x91   :  { %71 = vmax.xlane.f32.xlu1 %v70_v14 }
 0x104   :  { %v72_v16 = vpop.xlane.xlu1 %71 }
 0x105   :  { %v74_v17 = vperm.slane %v72_v16, 0  ;;  %v75_v18 = vperm.slane %v72_v16, 1 }
 0x107   :  { %v78_v19 = vsub.f32 %v56_v7, %v74_v17  ;;  %v79_v20 = vsub.f32 %v59_v10, %v75_v18 }
 0x109   :  { %v80_v21 = vmul.f32 1.442695, %v78_v19  ;;  %v82_v22 = vmul.f32 1.442695, %v79_v20 }
 0x10b   :  { %208 = vpow2.f32 %v80_v21 }
 0x10c   :  { %210 = vpow2.f32 %v82_v22 }
 0x111   :  { %v209_v23 = vpop.eup %208 }
 0x112   :  { %v211_v24 = vpop.eup %210  ;;  %87 = vperm.xlu1 %204, %v209_v23  }
 0x113   :  { %90 = vperm.xlu2 %205, %v211_v24  }
 0x16d   :  { %v91_v25 = vpop.permute.xlu2 %90 }
 0x16e   :  { %v93_v27 = vperm.slane %v91_v25, %v353_v9  ;;  %v136_v31 = vmul.f32 %v91_v25, %v46_v3 }
 0x170   :  { %v144_v33 = vsel %vm53_vm0, %v136_v31, 0.0 }
 0x171   :  { %v145_v35 = vrot.slane %v144_v33, 4 }
 0x173   :  { %v146_v38 = vadd.f32 %v145_v35, %v144_v33 }
 0x175   :  { %v147_v40 = vrot.slane %v146_v38, 2 }
 0x177   :  { %v148_v44 = vadd.f32 %v147_v40, %v146_v38 }
 0x179   :  { %v149_v50 = vrot.slane %v148_v44, 1 }
 0x17b   :  { %v150_v56 = vadd.f32 %v149_v50, %v148_v44 }
 0x184   :  { %v88_v26 = vpop.permute.xlu1 %87 }
 0x185   :  { %v92_v28 = vperm.slane %v88_v26, %v353_v9  ;;  %v135_v32 = vmul.f32 %v88_v26, %v45_v0 }
 0x187   :  { %v94_v29 = vsel %vm66_vm1, %v93_v27, %v92_v28  ;;  %v137_v34 = vsel %vm53_vm0, %v135_v32, 0.0 }
 0x188   :  { %v96_v30 = vsel %vm69_vm2, %v94_v29, 0.0  ;;  %v138_v36 = vrot.slane %v137_v34, 4 }
 0x189   :  { %97 = vadd.xlane.f32.xlu2 %v96_v30 }
 0x18a   :  { %v139_v39 = vadd.f32 %v138_v36, %v137_v34 }
 0x18c   :  { %v140_v42 = vrot.slane %v139_v39, 2 }
 0x18e   :  { %v141_v47 = vadd.f32 %v140_v42, %v139_v39 }
 0x190   :  { %v142_v53 = vrot.slane %v141_v47, 1 }
 0x192   :  { %v143_v60 = vadd.f32 %v142_v53, %v141_v47 }
 0x1fc   :  { %v98_v37 = vpop.xlane.xlu2 %97 }
 0x1fd   :  { %212 = vrcp.f32 %v98_v37  ;;  %v110_v46 = vand.u32 2147483648, %v98_v37  ;;  %v108_v49 = vand.u32 2147483647, %v98_v37  ;;  %vm104_vm4 = vweird.f32 %v98_v37 }
 0x1ff   :  { %v111_v52 = vor.u32 1.1754944e-38, %v110_v46  ;;  %vm109_vm6 = vcmp.eq.f32.partialorder %v108_v49, 8.507059e+37 }
 0x203   :  { %v213_v41 = vpop.eup %212 }
 0x204   :  { %v100_v43 = vmul.f32 %v213_v41, %v98_v37  ;;  %vm105_vm3 = vweird.f32 %v213_v41 }
 0x205   :  { %vm106_vm5 = vmor %vm104_vm4, %vm105_vm3 }
 0x206   :  { %v101_v45 = vsub.f32 1.0, %v100_v43 }
 0x208   :  { %v102_v48 = vmul.f32 %v213_v41, %v101_v45 }
 0x20a   :  { %v103_v51 = vadd.f32 %v213_v41, %v102_v48 }
 0x20c   :  { %v107_v54 = vsel %vm106_vm5, %v213_v41, %v103_v51 }
 0x20d   :  { %v112_v55 = vsel %vm109_vm6, %v111_v52, %v107_v54 }
 0x20e   :  { %v151_v57 = vrot.slane %v112_v55, 1  ;;  %v115_v58 = vperm.slane %v112_v55, 1  ;;  %v114_v59 = vperm.slane %v112_v55, 0  ;;  %v154_v0 = vmul.f32 %v143_v60, %v112_v55 }
 0x210   :  { %v119_v61 = vmul.f32 %v211_v24, %v115_v58  ;;  %v118_v62 = vmul.f32 %v209_v23, %v114_v59  ;;  %v155_v63 = vmul.f32 %v151_v57, %v150_v56 }
 0x212   :  { %126 = vperm.xlu1 %204, %v119_v61   ;;  %123 = vperm.xlu0 %206, %v118_v62   ;;  %v158_v1 = vrot.slane %v155_v63, 7 }
 0x214   :  { %v159_v2 = vsel %vm66_vm1, %v158_v1, %v154_v0 }
 0x215   :  { %162 = vst.msk [vmem:[#allocation7] sm:$0x3] %vm161_vm7, %v159_v2 }
 0x216   :  { %173 = dma.vmem_to_hbm [thread:$0]  %s169_s1, 32, %s171_s26, [#allocation4]  }
 0x284   :  { %v127_v3 = vpop.permute.xlu1 %126  ;;  %v124_v4 = vpop.permute.xlu0 %123 }
 0x285   :  { %v129_v5 = vperm.slane %v127_v3, %v353_v9  ;;  %v128_v6 = vperm.slane %v124_v4, %v353_v9 }
 0x287   :  { %v130_v7 = vsel %vm66_vm1, %v129_v5, %v128_v6 }
 0x288   :  { %132 = vst.msk [vmem:[#allocation8] sm:$0x3] %vm69_vm2, %v130_v7 }
 0x289   :  { %184 = dma.vmem_to_hbm [thread:$0]  %s180_s28, 32, %s182_s4, [#allocation9]  }
 0x28a   :  { %314 = dma.done.wait [#allocation4], 32  }
 0x28b   :  { %315 = vsyncadd [#allocation4], 4294967264 }
 0x28c   :  { %316 = dma.done.wait [#allocation9], 32  }
 0x28d   :  { %317 = vsyncadd [#allocation9], 4294967264 }
 0x28e   :  { %193 = vsyncpa [#allocation3], 1 }
 0x28f   :  { %194 = vsyncpa [#allocation6], 1 }
 0x290   :  { %195 = vsyncpa [#allocation4], 1 }
 0x291   :  { %196 = vsyncpa [#allocation9], 1 }

</bundles_post_ra>
